<compile_context>
chip_gen: v7x
topology: tpu7x:2x2x1
jax: 0.10.0
libtpu: 0.0.40
codegen_flags: <defaults>
</compile_context>

<pallas_src>
import jax
import jax.numpy as jnp
from jax.experimental import pallas as pl
from jax.experimental.pallas import tpu as pltpu


def _round_up(x, m):
    return ((x + m - 1) // m) * m


def _mlp_kernel(x_ref,
                w1_ref, b1_ref,
                w2_ref, b2_ref,
                w3_ref, b3_ref,
                w4_ref, b4_ref,
                out_ref):
    cd = w1_ref.dtype  # compute dtype (bf16); accumulation is always f32
    # fc1 + relu (x cast to bf16 in-kernel: VPU work hidden under DMA/MXU slack)
    h = jnp.dot(x_ref[...].astype(cd), w1_ref[...],
                preferred_element_type=jnp.float32)
    h = jnp.maximum(h + b1_ref[...], 0.0)
    # fc2 + relu
    h = jnp.dot(h.astype(cd), w2_ref[...], preferred_element_type=jnp.float32)
    h = jnp.maximum(h + b2_ref[...], 0.0)
    # fc3 + relu (out dim padded to 128 lanes; padded lanes stay exactly zero)
    h = jnp.dot(h.astype(cd), w3_ref[...], preferred_element_type=jnp.float32)
    h = jnp.maximum(h + b3_ref[...], 0.0)
    # fc4 (no activation); class dim padded to 128 -> lane-dense store
    h = jnp.dot(h.astype(cd), w4_ref[...], preferred_element_type=jnp.float32)
    out_ref[...] = (h + b4_ref[...]).astype(out_ref.dtype)


def prepare_params(params, compute_dtype=jnp.bfloat16):
    """One-time weight prep (cast + exact zero-padding), hoisted out of the
    per-call forward path."""
    (w1, b1), (w2, b2), (w3, b3), (w4, b4) = (
        params["fc1"], params["fc2"], params["fc3"], params["fc4"])
    num_classes = w4.shape[1]
    h3 = w3.shape[1]

    # Pad fc3 hidden dim (64 -> 128) so the fc3/fc4 intermediate is lane-dense.
    h3p = _round_up(h3, 128)
    if h3p != h3:
        w3 = jnp.pad(w3, ((0, 0), (0, h3p - h3)))
        b3 = jnp.pad(b3, ((0, 0), (0, h3p - h3)))
        w4 = jnp.pad(w4, ((0, h3p - h3), (0, 0)))
    # Pad class dim to 128 lanes so the output store is unmasked / lane-dense.
    cp = _round_up(num_classes, 128)
    if cp != num_classes:
        w4 = jnp.pad(w4, ((0, 0), (0, cp - num_classes)))
        b4 = jnp.pad(b4, ((0, 0), (0, cp - num_classes)))

    cd = compute_dtype
    return {
        "w1": w1.astype(cd), "b1": b1.astype(jnp.float32),
        "w2": w2.astype(cd), "b2": b2.astype(jnp.float32),
        "w3": w3.astype(cd), "b3": b3.astype(jnp.float32),
        "w4": w4.astype(cd), "b4": b4.astype(jnp.float32),
        "num_classes": num_classes,
    }


def hand_gesture_model_forward(x, prepared, *, batch_tile=1024,
                               out_dtype=jnp.float32):
    """x: [B, input_size] float32 (raw, unpadded).  prepared: prepare_params()."""
    B, D = x.shape
    w1, b1 = prepared["w1"], prepared["b1"]
    w2, b2 = prepared["w2"], prepared["b2"]
    w3, b3 = prepared["w3"], prepared["b3"]
    w4, b4 = prepared["w4"], prepared["b4"]
    num_classes = prepared["num_classes"]
    H1, H2, H3p, Cp = w1.shape[1], w2.shape[1], w3.shape[1], w4.shape[1]

    # --- batch tile selection ---
    # Big tiles amortize the ~0.35 us per-grid-step overhead (mem-bound kernel);
    # cap at 2048 so per-step VMEM (~11 MiB) fits every generation's budget.
    tb = min(int(batch_tile), 2048, _round_up(B, 8))
    tb = max(8, _round_up(tb, 8))
    # Keep >= 2 grid steps for large batches so the "parallel" batch axis can
    # shard across v7x's two TensorCores (no effect on v5e/v6e).
    if B >= 256 and pl.cdiv(B, tb) < 2:
        tb = max(128, _round_up(pl.cdiv(B, 2), 8))

    grid = (pl.cdiv(B, tb),)  # ragged last block handled by Pallas; OOB input
    # rows only produce garbage in output rows >= B, which are never written.

    # Weights/biases as full-array blocks (constant index_map): DMA'd once,
    # resident in VMEM across all batch tiles.
    def full_spec(shape):
        nd = len(shape)
        return pl.BlockSpec(shape, lambda i, _nd=nd: (0,) * _nd)

    out_itemsize = jnp.dtype(out_dtype).itemsize
    weight_bytes = sum(int(a.size) * a.dtype.itemsize
                       for a in (w1, b1, w2, b2, w3, b3, w4, b4))

    # Advisory cost estimate (derived from actual shapes, not hard-coded dims).
    flops = 2 * B * (D * H1 + H1 * H2 + H2 * H3p + H3p * Cp)
    bytes_accessed = (int(x.size) * x.dtype.itemsize
                      + B * Cp * out_itemsize
                      + weight_bytes)

    # Explicit VMEM budget with headroom (double-buffered x/out blocks, resident
    # weights, f32+bf16 intermediates), capped well under v7x's 64 MiB physical.
    vmem_est = (2 * tb * D * x.dtype.itemsize
                + 2 * tb * Cp * out_itemsize
                + 2 * weight_bytes
                + tb * (H1 + H2 + H3p + Cp) * 6)
    vmem_limit = int(min(max(2 * vmem_est, 16 << 20), 56 << 20))

    out = pl.pallas_call(
        _mlp_kernel,
        out_shape=jax.ShapeDtypeStruct((B, Cp), out_dtype),
        grid_spec=pltpu.PrefetchScalarGridSpec(
            num_scalar_prefetch=0,
            grid=grid,
            in_specs=[
                pl.BlockSpec((tb, D), lambda i: (i, 0)),   # x batch tile (raw f32)
                full_spec(w1.shape), full_spec(b1.shape),
                full_spec(w2.shape), full_spec(b2.shape),
                full_spec(w3.shape), full_spec(b3.shape),
                full_spec(w4.shape), full_spec(b4.shape),
            ],
            out_specs=pl.BlockSpec((tb, Cp), lambda i: (i, 0)),
        ),
        compiler_params=pltpu.CompilerParams(
            dimension_semantics=("parallel",),   # batch tiles shard across TCs
            vmem_limit_bytes=vmem_limit),
        cost_estimate=pl.CostEstimate(
            flops=flops, transcendentals=0, bytes_accessed=bytes_accessed),
    )(x, w1, b1, w2, b2, w3, b3, w4, b4)

    # Strip class padding (no batch padding exists: out_shape uses the true B).
    return out[:, :num_classes]


def init_params(key, input_size, num_classes):
    """Deterministic init mimicking nn.Linear default (uniform +/-1/sqrt(fan_in)).

    Weights stored as [in_features, out_features]; biases as [1, out_features]
    so they broadcast cleanly inside the kernel.
    """
    dims = [(input_size, 256), (256, 128), (128, 64), (64, num_classes)]
    names = ["fc1", "fc2", "fc3", "fc4"]
    params = {}
    for name, (fan_in, fan_out) in zip(names, dims):
        key, kw, kb = jax.random.split(key, 3)
        bound = 1.0 / (fan_in ** 0.5)
        w = jax.random.uniform(kw, (fan_in, fan_out), jnp.float32,
                               minval=-bound, maxval=bound)
        b = jax.random.uniform(kb, (1, fan_out), jnp.float32,
                               minval=-bound, maxval=bound)
        params[name] = (w, b)
    return params


def reference_forward(x, params, compute_dtype=jnp.bfloat16):
    """Pure-JAX reference with the same bf16-weights / f32-accumulate recipe."""
    (w1, b1), (w2, b2), (w3, b3), (w4, b4) = (
        params["fc1"], params["fc2"], params["fc3"], params["fc4"])
    cd = compute_dtype

    def lin(h, w, b):
        return jnp.dot(h.astype(cd), w.astype(cd),
                       preferred_element_type=jnp.float32) + b

    h = jnp.maximum(lin(x, w1, b1), 0.0)
    h = jnp.maximum(lin(h, w2, b2), 0.0)
    h = jnp.maximum(lin(h, w3, b3), 0.0)
    return lin(h, w4, b4)


if __name__ == "__main__":
    input_size = 64     # e.g. flattened hand-landmark features
    num_classes = 10
    batch = 8

    key = jax.random.PRNGKey(0)
    key, kx = jax.random.split(key)
    x = jax.random.normal(kx, (batch, input_size), jnp.float32)
    params = init_params(key, input_size, num_classes)

    prepared = prepare_params(params)          # one-time weight prep (hoisted)
    out = hand_gesture_model_forward(x, prepared)
    out = jax.block_until_ready(out)

    ref = reference_forward(x, params)
    assert out.shape == (batch, num_classes)
    assert jnp.allclose(out, ref, atol=2e-2, rtol=2e-2), "mismatch vs reference"

    print("KERNEL_OK")
</pallas_src>

<mosaic_0001>
module attributes {stable_mosaic.version = 11 : i64} {
  func.func @_mlp_kernel(%arg0: i32, %arg1: memref<8x64xf32, #tpu.memory_space<vmem>>, %arg2: memref<64x256xbf16, #tpu.memory_space<vmem>>, %arg3: memref<1x256xf32, #tpu.memory_space<vmem>>, %arg4: memref<256x128xbf16, #tpu.memory_space<vmem>>, %arg5: memref<1x128xf32, #tpu.memory_space<vmem>>, %arg6: memref<128x128xbf16, #tpu.memory_space<vmem>>, %arg7: memref<1x128xf32, #tpu.memory_space<vmem>>, %arg8: memref<128x128xbf16, #tpu.memory_space<vmem>>, %arg9: memref<1x128xf32, #tpu.memory_space<vmem>>, %arg10: memref<8x128xf32, #tpu.memory_space<vmem>>) attributes {dimension_semantics = [#tpu.dimension_semantics<parallel>], iteration_bounds = array<i64: 1>, scalar_prefetch = 0 : i64, scratch_operands = 0 : i64, tpu.core_type = #tpu.core_type<tc>, window_params = [{transform_indices = @transform_0, window_bounds = array<i64: 8, 64>}, {pipeline_mode = #tpu.pipeline_mode<synchronous>, transform_indices = @transform_1, window_bounds = array<i64: 64, 256>}, {pipeline_mode = #tpu.pipeline_mode<synchronous>, transform_indices = @transform_2, window_bounds = array<i64: 1, 256>}, {pipeline_mode = #tpu.pipeline_mode<synchronous>, transform_indices = @transform_3, window_bounds = array<i64: 256, 128>}, {pipeline_mode = #tpu.pipeline_mode<synchronous>, transform_indices = @transform_4, window_bounds = array<i64: 1, 128>}, {pipeline_mode = #tpu.pipeline_mode<synchronous>, transform_indices = @transform_5, window_bounds = array<i64: 128, 128>}, {pipeline_mode = #tpu.pipeline_mode<synchronous>, transform_indices = @transform_6, window_bounds = array<i64: 1, 128>}, {pipeline_mode = #tpu.pipeline_mode<synchronous>, transform_indices = @transform_7, window_bounds = array<i64: 128, 128>}, {pipeline_mode = #tpu.pipeline_mode<synchronous>, transform_indices = @transform_8, window_bounds = array<i64: 1, 128>}, {transform_indices = @transform_9, window_bounds = array<i64: 8, 128>}]} {
    %c0 = arith.constant 0 : index
    %c0_0 = arith.constant 0 : index
    %0 = vector.load %arg1[%c0, %c0_0] : memref<8x64xf32, #tpu.memory_space<vmem>>, vector<8x64xf32>
    %1 = arith.truncf %0 : vector<8x64xf32> to vector<8x64xbf16>
    %c0_1 = arith.constant 0 : index
    %c0_2 = arith.constant 0 : index
    %2 = vector.load %arg2[%c0_1, %c0_2] : memref<64x256xbf16, #tpu.memory_space<vmem>>, vector<64x256xbf16>
    %cst = arith.constant dense<0.000000e+00> : vector<8x256xf32>
    %3 = tpu.matmul %1, %2, %cst {dimension_numbers = #tpu.dot_dimension_numbers<[1], [0], [0], [1], [0, 0, 1, 1], [], []>} : vector<8x64xbf16>, vector<64x256xbf16>, vector<8x256xf32> -> vector<8x256xf32>
    %c0_3 = arith.constant 0 : index
    %c0_4 = arith.constant 0 : index
    %4 = vector.load %arg3[%c0_3, %c0_4] : memref<1x256xf32, #tpu.memory_space<vmem>>, vector<1x256xf32>
    %5 = vector.broadcast %4 : vector<1x256xf32> to vector<8x256xf32>
    %6 = arith.addf %3, %5 : vector<8x256xf32>
    %cst_5 = arith.constant 0.000000e+00 : f32
    %7 = vector.broadcast %cst_5 : f32 to vector<8x256xf32>
    %8 = arith.maximumf %6, %7 : vector<8x256xf32>
    %9 = arith.truncf %8 : vector<8x256xf32> to vector<8x256xbf16>
    %c0_6 = arith.constant 0 : index
    %c0_7 = arith.constant 0 : index
    %10 = vector.load %arg4[%c0_6, %c0_7] : memref<256x128xbf16, #tpu.memory_space<vmem>>, vector<256x128xbf16>
    %cst_8 = arith.constant dense<0.000000e+00> : vector<8x128xf32>
    %11 = tpu.matmul %9, %10, %cst_8 {dimension_numbers = #tpu.dot_dimension_numbers<[1], [0], [0], [1], [0, 0, 1, 1], [], []>} : vector<8x256xbf16>, vector<256x128xbf16>, vector<8x128xf32> -> vector<8x128xf32>
    %c0_9 = arith.constant 0 : index
    %c0_10 = arith.constant 0 : index
    %12 = vector.load %arg5[%c0_9, %c0_10] : memref<1x128xf32, #tpu.memory_space<vmem>>, vector<1x128xf32>
    %13 = vector.broadcast %12 : vector<1x128xf32> to vector<8x128xf32>
    %14 = arith.addf %11, %13 : vector<8x128xf32>
    %cst_11 = arith.constant 0.000000e+00 : f32
    %15 = vector.broadcast %cst_11 : f32 to vector<8x128xf32>
    %16 = arith.maximumf %14, %15 : vector<8x128xf32>
    %17 = arith.truncf %16 : vector<8x128xf32> to vector<8x128xbf16>
    %c0_12 = arith.constant 0 : index
    %c0_13 = arith.constant 0 : index
    %18 = vector.load %arg6[%c0_12, %c0_13] : memref<128x128xbf16, #tpu.memory_space<vmem>>, vector<128x128xbf16>
    %cst_14 = arith.constant dense<0.000000e+00> : vector<8x128xf32>
    %19 = tpu.matmul %17, %18, %cst_14 {dimension_numbers = #tpu.dot_dimension_numbers<[1], [0], [0], [1], [0, 0, 1, 1], [], []>} : vector<8x128xbf16>, vector<128x128xbf16>, vector<8x128xf32> -> vector<8x128xf32>
    %c0_15 = arith.constant 0 : index
    %c0_16 = arith.constant 0 : index
    %20 = vector.load %arg7[%c0_15, %c0_16] : memref<1x128xf32, #tpu.memory_space<vmem>>, vector<1x128xf32>
    %21 = vector.broadcast %20 : vector<1x128xf32> to vector<8x128xf32>
    %22 = arith.addf %19, %21 : vector<8x128xf32>
    %cst_17 = arith.constant 0.000000e+00 : f32
    %23 = vector.broadcast %cst_17 : f32 to vector<8x128xf32>
    %24 = arith.maximumf %22, %23 : vector<8x128xf32>
    %25 = arith.truncf %24 : vector<8x128xf32> to vector<8x128xbf16>
    %c0_18 = arith.constant 0 : index
    %c0_19 = arith.constant 0 : index
    %26 = vector.load %arg8[%c0_18, %c0_19] : memref<128x128xbf16, #tpu.memory_space<vmem>>, vector<128x128xbf16>
    %cst_20 = arith.constant dense<0.000000e+00> : vector<8x128xf32>
    %27 = tpu.matmul %25, %26, %cst_20 {dimension_numbers = #tpu.dot_dimension_numbers<[1], [0], [0], [1], [0, 0, 1, 1], [], []>} : vector<8x128xbf16>, vector<128x128xbf16>, vector<8x128xf32> -> vector<8x128xf32>
    %c0_21 = arith.constant 0 : index
    %c0_22 = arith.constant 0 : index
    %28 = vector.load %arg9[%c0_21, %c0_22] : memref<1x128xf32, #tpu.memory_space<vmem>>, vector<1x128xf32>
    %29 = vector.broadcast %28 : vector<1x128xf32> to vector<8x128xf32>
    %30 = arith.addf %27, %29 : vector<8x128xf32>
    %c0_23 = arith.constant 0 : index
    %c0_24 = arith.constant 0 : index
    %31 = vector.load %arg10[%c0_23, %c0_24] : memref<8x128xf32, #tpu.memory_space<vmem>>, vector<8x128xf32>
    tpu.vector_store %arg10[%c0_23, %c0_24], %30 {strides = array<i32>} : memref<8x128xf32, #tpu.memory_space<vmem>>, vector<8x128xf32>,
    return
  }
  func.func @transform_0(%arg0: i32) -> (i32, i32) {
    %c0_i32 = arith.constant 0 : i32
    %c0_i32_0 = arith.constant 0 : i32
    return %arg0, %c0_i32 : i32, i32
  }
  func.func @transform_1(%arg0: i32) -> (i32, i32) {
    %c0_i32 = arith.constant 0 : i32
    %c0_i32_0 = arith.constant 0 : i32
    %c0_i32_1 = arith.constant 0 : i32
    return %c0_i32, %c0_i32_0 : i32, i32
  }
  func.func @transform_2(%arg0: i32) -> (i32, i32) {
    %c0_i32 = arith.constant 0 : i32
    %c0_i32_0 = arith.constant 0 : i32
    %c0_i32_1 = arith.constant 0 : i32
    return %c0_i32, %c0_i32_0 : i32, i32
  }
  func.func @transform_3(%arg0: i32) -> (i32, i32) {
    %c0_i32 = arith.constant 0 : i32
    %c0_i32_0 = arith.constant 0 : i32
    %c0_i32_1 = arith.constant 0 : i32
    return %c0_i32, %c0_i32_0 : i32, i32
  }
  func.func @transform_4(%arg0: i32) -> (i32, i32) {
    %c0_i32 = arith.constant 0 : i32
    %c0_i32_0 = arith.constant 0 : i32
    %c0_i32_1 = arith.constant 0 : i32
    return %c0_i32, %c0_i32_0 : i32, i32
  }
  func.func @transform_5(%arg0: i32) -> (i32, i32) {
    %c0_i32 = arith.constant 0 : i32
    %c0_i32_0 = arith.constant 0 : i32
    %c0_i32_1 = arith.constant 0 : i32
    return %c0_i32, %c0_i32_0 : i32, i32
  }
  func.func @transform_6(%arg0: i32) -> (i32, i32) {
    %c0_i32 = arith.constant 0 : i32
    %c0_i32_0 = arith.constant 0 : i32
    %c0_i32_1 = arith.constant 0 : i32
    return %c0_i32, %c0_i32_0 : i32, i32
  }
  func.func @transform_7(%arg0: i32) -> (i32, i32) {
    %c0_i32 = arith.constant 0 : i32
    %c0_i32_0 = arith.constant 0 : i32
    %c0_i32_1 = arith.constant 0 : i32
    return %c0_i32, %c0_i32_0 : i32, i32
  }
  func.func @transform_8(%arg0: i32) -> (i32, i32) {
    %c0_i32 = arith.constant 0 : i32
    %c0_i32_0 = arith.constant 0 : i32
    %c0_i32_1 = arith.constant 0 : i32
    return %c0_i32, %c0_i32_0 : i32, i32
  }
  func.func @transform_9(%arg0: i32) -> (i32, i32) {
    %c0_i32 = arith.constant 0 : i32
    %c0_i32_0 = arith.constant 0 : i32
    return %arg0, %c0_i32 : i32, i32
  }
}

</mosaic_0001>

<bundles_post_ra>
// kernel: tpu_custom_call.1
= control target key start
LH: loop header
LB: loop body
LE: loop exit
PB: predicated region body
PF: predicated region fallthrough
CT: control target
= control target key end

     0   :  { %14 = vsyncpa [#allocation3], 0  ;;  %s1125_s0 = inlined_call_operand.hbm [shape: f32[8,64], index: 0, kind: input, shape index: {}]   ;;  %s1126_s1 = inlined_call_operand.hbm [shape: bf16[64,256], index: 1, kind: input, shape index: {}]   ;;  %s1127_s2 = inlined_call_operand.vmem [shape: f32[1,256], index: 2, kind: input, shape index: {}]   ;;  %s1128_s3 = inlined_call_operand.hbm [shape: bf16[256,128], index: 3, kind: input, shape index: {}]   ;;  %s1129_s4 = inlined_call_operand.vmem [shape: f32[1,128], index: 4, kind: input, shape index: {}]   ;;  %s1130_s5 = inlined_call_operand.hbm [shape: bf16[128,128], index: 5, kind: input, shape index: {}]   ;;  %s1131_s6 = inlined_call_operand.vmem [shape: f32[1,128], index: 6, kind: input, shape index: {}]   ;;  %s1132_s7 = inlined_call_operand.hbm [shape: bf16[128,128], index: 7, kind: input, shape index: {}]   ;;  %s1133_s8 = inlined_call_operand.vmem [shape: f32[1,128], index: 8, kind: input, shape index: {}]   ;;  %s1134_s9 = inlined_call_operand.hbm [shape: f32[8,128], index: 9, kind: output, shape index: {}]  }
   0x1   :  { %15 = vsyncpa [#allocation6], 0 }
   0x2   :  { %16 = vsyncpa [#allocation9], 0 }
   0x3   :  { %17 = vsyncpa [#allocation4], 0  ;;  %s951_s30 = smov [#allocation5]   ;;  %s811_s13 = scalar_lea.hbm %s1126_s1, 1024 }
   0x4   :  { %s33_s10 = sshll.u32 %s951_s30, 4  ;;  %p812_p0 = scmp.ne.s32.totalorder %s1126_s1, %s811_s13  ;;  %s34_s10 = int_to_ptr.vmem [resolvable:$true] %s33_s10 }
   0x5   :  { %p815_p1 = scmp.lt.u32.totalorder %s811_s13, %s1126_s1 }
   0x7   :  { %p817_p2 = pnand %p815_p1, %p812_p0 }
   0x9   :  { %820 = shalt.err (!%p817_p2)
}
   0xa   :  { %s821_s18 = scalar_lea.vmem %s34_s10, 1024  ;;  %p826_p4 = scmp.lt.s32.totalorder %s34_s10, %s34_s10 }
   0xb   :  { %p822_p3 = scmp.ne.s32.totalorder %s34_s10, %s821_s18  ;;  %p827_p5 = scmp.lt.s32.totalorder %s821_s18, %s821_s18 }
   0xd   :  { %p828_p6 = por %p827_p5, %p826_p4 }
   0xf   :  { %p829_p7 = pnand %p828_p6, %p822_p3 }
  0x11   :  { %832 = shalt.err (!%p829_p7)
}
  0x12   :  { %s952_s19 = smov 128   ;;  %s953_s20 = smov 8  }
  0x13   :  { %39 = dma.hbm_to_vmem [thread:$0]  %s1126_s1, 1024, %s34_s10, [#allocation6], %s952_s19, %s952_s19, %s953_s20  }
  0x14   :  { %s954_s23 = smov [#allocation8]   ;;  %s955_s25 = smov [#allocation2]  }
  0x15   :  { %s61_s24 = sshll.u32 %s954_s23, 4  ;;  %s24_s26 = sshll.u32 %s955_s25, 4  ;;  %s62_s24 = int_to_ptr.vmem [resolvable:$true] %s61_s24  ;;  %s25_s26 = int_to_ptr.vmem [resolvable:$true] %s24_s26 }
  0x16   :  { %s833_s29 = scalar_lea.hbm %s1130_s5, 1024 }
  0x17   :  { %p834_p8 = scmp.ne.s32.totalorder %s1130_s5, %s833_s29  ;;  %p837_p9 = scmp.lt.u32.totalorder %s833_s29, %s1130_s5 }
  0x19   :  { %p839_p10 = pnand %p837_p9, %p834_p8 }
  0x1b   :  { %842 = shalt.err (!%p839_p10)
}
  0x1c   :  { %s843_s1 = scalar_lea.vmem %s62_s24, 1024  ;;  %p848_p12 = scmp.lt.s32.totalorder %s62_s24, %s62_s24 }
  0x1d   :  { %p844_p11 = scmp.ne.s32.totalorder %s62_s24, %s843_s1  ;;  %p849_p13 = scmp.lt.s32.totalorder %s843_s1, %s843_s1 }
  0x1f   :  { %p850_p0 = por %p849_p13, %p848_p12 }
  0x21   :  { %p851_p1 = pnand %p850_p0, %p844_p11 }
  0x23   :  { %854 = shalt.err (!%p851_p1)
}
  0x24   :  { %s956_s10 = smov 64   ;;  %s957_s14 = smov 4  }
  0x25   :  { %67 = dma.hbm_to_vmem [thread:$0]  %s1130_s5, 1024, %s62_s24, [#allocation9], %s956_s10, %s956_s10, %s957_s14  }
  0x26   :  { %s855_s19 = scalar_lea.hbm %s1125_s0, 128 }
  0x27   :  { %p856_p2 = scmp.ne.s32.totalorder %s1125_s0, %s855_s19  ;;  %p859_p3 = scmp.lt.u32.totalorder %s855_s19, %s1125_s0 }
  0x29   :  { %p861_p4 = pnand %p859_p3, %p856_p2 }
  0x2b   :  { %864 = shalt.err (!%p861_p4)
}
  0x2c   :  { %s865_s25 = scalar_lea.vmem %s25_s26, 128  ;;  %p870_p6 = scmp.lt.s32.totalorder %s25_s26, %s25_s26 }
  0x2d   :  { %p866_p5 = scmp.ne.s32.totalorder %s25_s26, %s865_s25  ;;  %p871_p7 = scmp.lt.s32.totalorder %s865_s25, %s865_s25 }
  0x2f   :  { %p872_p8 = por %p871_p7, %p870_p6 }
  0x31   :  { %p873_p9 = pnand %p872_p8, %p866_p5 }
  0x33   :  { %876 = shalt.err (!%p873_p9)
}
  0x34   :  { %27 = dma.hbm_to_vmem [thread:$0]  %s1125_s0, 128, %s25_s26, [#allocation3]  }
  0x35   :  { %s958_s27 = smov [#allocation7]   ;;  %s959_s29 = smov [#allocation10]  }
  0x36   :  { %s47_s28 = sshll.u32 %s958_s27, 4  ;;  %s75_s30 = sshll.u32 %s959_s29, 4  ;;  %s48_s28 = int_to_ptr.vmem [resolvable:$true] %s47_s28  ;;  %s76_s30 = int_to_ptr.vmem [resolvable:$true] %s75_s30 }
  0x37   :  { %s877_s13 = scalar_lea.hbm %s1128_s3, 2048 }
  0x38   :  { %p878_p10 = scmp.ne.s32.totalorder %s1128_s3, %s877_s13  ;;  %p881_p11 = scmp.lt.u32.totalorder %s877_s13, %s1128_s3 }
  0x3a   :  { %p883_p12 = pnand %p881_p11, %p878_p10 }
  0x3c   :  { %886 = shalt.err (!%p883_p12)
}
  0x3d   :  { %s887_s0 = scalar_lea.vmem %s48_s28, 2048  ;;  %p892_p0 = scmp.lt.s32.totalorder %s48_s28, %s48_s28 }
  0x3e   :  { %p888_p13 = scmp.ne.s32.totalorder %s48_s28, %s887_s0  ;;  %p893_p1 = scmp.lt.s32.totalorder %s887_s0, %s887_s0 }
  0x40   :  { %p894_p2 = por %p893_p1, %p892_p0 }
  0x42   :  { %p895_p3 = pnand %p894_p2, %p888_p13 }
  0x44   :  { %898 = shalt.err (!%p895_p3)
}
  0x45   :  { %53 = dma.hbm_to_vmem [thread:$0]  %s1128_s3, 2048, %s48_s28, [#allocation6], %s956_s10, %s956_s10, %s957_s14  }
  0x46   :  { %s899_s21 = scalar_lea.hbm %s1132_s7, 1024 }
  0x47   :  { %p900_p4 = scmp.ne.s32.totalorder %s1132_s7, %s899_s21  ;;  %p903_p5 = scmp.lt.u32.totalorder %s899_s21, %s1132_s7 }
  0x49   :  { %p905_p6 = pnand %p903_p5, %p900_p4 }
  0x4b   :  { %908 = shalt.err (!%p905_p6)
}
  0x4c   :  { %s909_s24 = scalar_lea.vmem %s76_s30, 1024  ;;  %p914_p8 = scmp.lt.s32.totalorder %s76_s30, %s76_s30 }
  0x4d   :  { %p910_p7 = scmp.ne.s32.totalorder %s76_s30, %s909_s24  ;;  %p915_p9 = scmp.lt.s32.totalorder %s909_s24, %s909_s24 }
  0x4f   :  { %p916_p10 = por %p915_p9, %p914_p8 }
  0x51   :  { %p917_p11 = pnand %p916_p10, %p910_p7 }
  0x53   :  { %920 = shalt.err (!%p917_p11)
}
  0x54   :  { %81 = dma.hbm_to_vmem [thread:$0]  %s1132_s7, 1024, %s76_s30, [#allocation9], %s956_s10, %s956_s10, %s957_s14  }
  0x55   :  { %943 = dma.done.wait [#allocation3], 128  }
  0x56   :  { %944 = vsyncadd [#allocation3], 4294967168 }
  0x57   :  { %945 = dma.done.wait [#allocation6], 3072  }
  0x58   :  { %946 = vsyncadd [#allocation6], 4294964224 }
  0x59   :  { %947 = dma.done.wait [#allocation9], 2048  }
  0x5a   :  { %948 = vsyncadd [#allocation9], 4294965248  ;;  %v960_v0 = vmov 0   ;;  %v767_v1 = vld [vmem:[#allocation5 + $0x4] ss:$8 sps:$4 sm:$0xff]   ;;  %v783_v13 = vld [vmem:[#allocation7 + $0x50] sm:$0xff]   ;;  %v112_v34 = vlaneseq }
  0x5b   :  { %198 = vmatprep.mubr.bf16.mxu0 %v960_v0  ;;  %v769_v2 = vld [vmem:[#allocation5] ss:$8 sps:$4 sm:$0xff]   ;;  %166 = vmatprep.subr.bf16.mxu0 %v767_v1  ;;  %v770_v3 = vld [vmem:[#allocation5 + $0x14] ss:$8 sps:$4 sm:$0xff]   ;;  %v772_v4 = vld [vmem:[#allocation5 + $0x10] ss:$8 sps:$4 sm:$0xff]  }
  0x5c   :  { %167 = vmatpush1.bf16.msra.mxu0 %v769_v2  ;;  %v773_v5 = vld [vmem:[#allocation5 + $0x24] ss:$8 sps:$4 sm:$0xff]   ;;  %v775_v6 = vld [vmem:[#allocation5 + $0x20] ss:$8 sps:$4 sm:$0xff]   ;;  %v776_v7 = vld [vmem:[#allocation5 + $0x34] ss:$8 sps:$4 sm:$0xff]  }
  0x5d   :  { %168 = vmatprep.subr.bf16.mxu0 %v770_v3  ;;  %v779_v8 = vld [vmem:[#allocation7 + $0x40] sm:$0xff]   ;;  %v781_v10 = vld [vmem:[#allocation7 + $0x48] sm:$0xff]   ;;  %v778_v11 = vld [vmem:[#allocation5 + $0x30] ss:$8 sps:$4 sm:$0xff]   ;;  %vm162_vm0 = vcmask 523264   ;;  %v961_v28 = vmov 0.0  }
  0x5e   :  { %v780_v9 = vld [vmem:[#allocation7] sm:$0xff]   ;;  %674 = vmatprep.subr.bf16.mxu1 %v779_v8  ;;  %v782_v12 = vld [vmem:[#allocation7 + $0x8] sm:$0xff]   ;;  %v100_v14 = vld [vmem:[#allocation2] sm:$0xff]  ;;  %v113_v35 = vshrl.u32 %v112_v34, 7  ;;  %vm962_vm1 = vmmov 0   ;;  %s963_s11 = smov [#allocation11]  }
  0x5f   :  { %675 = vmatpush3.bf16.msra.mxu1 %v780_v9  ;;  %v784_v15 = vld [vmem:[#allocation7 + $0x10] sm:$0xff]   ;;  %v101_v16 = vpack.c.bf16 %v100_v14, %v100_v14  ;;  %v785_v17 = vld [vmem:[#allocation7 + $0x58] sm:$0xff]   ;;  %v787_v19 = vld [vmem:[#allocation7 + $0x60] sm:$0xff]   ;;  %s619_s12 = sshll.u32 %s963_s11, 4  ;;  %s620_s12 = int_to_ptr.vmem [resolvable:$true] %s619_s12 }
  0x60   :  { %169 = vmatpush1.bf16.msra.mxu0 %v772_v4  ;;  %676 = vmatprep.subr.bf16.mxu1 %v781_v10  ;;  %v786_v18 = vld [vmem:[#allocation7 + $0x18] sm:$0xff]   ;;  %v788_v20 = vld [vmem:[#allocation7 + $0x20] sm:$0xff]   ;;  %v789_v21 = vld [vmem:[#allocation7 + $0x68] sm:$0xff]   ;;  %v114_v36 = vsub.s32 0, %v113_v35  ;;  %v118_v38 = vsub.s32 1, %v113_v35  ;;  %p926_p13 = scmp.lt.s32.totalorder %s620_s12, %s620_s12 }
  0x61   :  { %170 = vmatprep.subr.bf16.mxu0 %v773_v5  ;;  %v790_v22 = vld [vmem:[#allocation7 + $0x28] sm:$0xff]   ;;  %v791_v23 = vld [vmem:[#allocation7 + $0x70] sm:$0xff]   ;;  %v793_v25 = vld [vmem:[#allocation7 + $0x78] sm:$0xff]  }
  0x62   :  { %v792_v24 = vld [vmem:[#allocation7 + $0x30] sm:$0xff]   ;;  %v794_v26 = vld [vmem:[#allocation7 + $0x38] sm:$0xff]   ;;  %v795_v27 = vld [vmem:[#allocation8] sm:$0xff]  }
  0x63   :  { %677 = vmatpush3.bf16.msra.mxu1 %v782_v12  ;;  %v796_v29 = vld [vmem:[#allocation8 + $0x8] sm:$0xff]   ;;  %v797_v30 = vld [vmem:[#allocation8 + $0x10] sm:$0xff]   ;;  %v798_v31 = vld [vmem:[#allocation8 + $0x18] sm:$0xff]  }
  0x64   :  { %171 = vmatpush1.bf16.msra.mxu0 %v775_v6  ;;  %678 = vmatprep.subr.bf16.mxu1 %v783_v13  ;;  %v799_v32 = vld [vmem:[#allocation8 + $0x20] sm:$0xff]   ;;  %v800_v33 = vld [vmem:[#allocation8 + $0x28] sm:$0xff]   ;;  %v110_v37 = vld [vmem:[%s1127_s2] sm:$0x3] }
  0x65   :  { %172 = vmatprep.subr.bf16.mxu0 %v776_v7  ;;  %v115_v39 = vrot.slane %v110_v37, %v114_v36  ;;  %v119_v40 = vrot.slane %v110_v37, %v118_v38  ;;  %v801_v51 = vld [vmem:[#allocation8 + $0x30] sm:$0xff]   ;;  %v802_v52 = vld [vmem:[#allocation8 + $0x38] sm:$0xff]   ;;  %v803_v53 = vld [vmem:[#allocation10] sm:$0xff]  }
  0x66   :  { %v804_v54 = vld [vmem:[#allocation10 + $0x8] sm:$0xff]   ;;  %v805_v55 = vld [vmem:[#allocation10 + $0x10] sm:$0xff]   ;;  %v806_v56 = vld [vmem:[#allocation10 + $0x18] sm:$0xff]  }
  0x67   :  { %679 = vmatpush3.bf16.msra.mxu1 %v784_v15  ;;  %v807_v57 = vld [vmem:[#allocation10 + $0x20] sm:$0xff]   ;;  %v808_v58 = vld [vmem:[#allocation10 + $0x28] sm:$0xff]   ;;  %v639_v60 = vld [vmem:[%s1129_s4] ss:$0 sm:$0xff] }
  0x68   :  { %173 = vmatpush1.bf16.msra.mxu0 %v778_v11  ;;  %680 = vmatprep.subr.bf16.mxu1 %v785_v17  ;;  %v809_v4 = vld [vmem:[#allocation10 + $0x30] sm:$0xff]   ;;  %v810_v5 = vld [vmem:[#allocation10 + $0x38] sm:$0xff]  }
  0x69   :  { %714 = vmatprep.subr.bf16.mxu0 %v961_v28  ;;  %v656_v6 = vld [vmem:[%s1131_s6] ss:$0 sm:$0xff]  ;;  %s921_s6 = scalar_lea.vmem %s620_s12, 128 }
  0x6a   :  { %v665_v14 = vld [vmem:[%s1133_s8] ss:$0 sm:$0xff]  ;;  %p922_p12 = scmp.ne.s32.totalorder %s620_s12, %s921_s6  ;;  %p927_p0 = scmp.lt.s32.totalorder %s921_s6, %s921_s6 }
  0x6b   :  { %638 = vmatmul.mubr.msk.bf16.vlgmr.msra.gmra.mrb[0].mxu0 %vm162_vm0, %v101_v16  ;;  %681 = vmatpush3.bf16.msra.mxu1 %v786_v18 }
  0x6c   :  { %682 = vmatprep.subr.bf16.mxu1 %v787_v19  ;;  %715 = vmatpush3.bf16.msra.mxu0 %v795_v27  ;;  %p928_p1 = por %p927_p0, %p926_p13 }
  0x6d   :  { %716 = vmatprep.subr.bf16.mxu0 %v961_v28  ;;  %730 = vmatprep.mubr.msk.bf16.mxu0 %vm962_vm1, %v961_v28 }
  0x6e   :  { %p929_p2 = pnand %p928_p1, %p922_p12 }
  0x6f   :  { %683 = vmatpush3.bf16.msra.mxu1 %v788_v20 }
  0x70   :  { %684 = vmatprep.subr.bf16.mxu1 %v789_v21  ;;  %717 = vmatpush3.bf16.msra.mxu0 %v796_v29 }
  0x71   :  { %718 = vmatprep.subr.bf16.mxu0 %v961_v28 }
  0x73   :  { %685 = vmatpush3.bf16.msra.mxu1 %v790_v22 }
  0x74   :  { %686 = vmatprep.subr.bf16.mxu1 %v791_v23  ;;  %719 = vmatpush3.bf16.msra.mxu0 %v797_v30 }
  0x75   :  { %720 = vmatprep.subr.bf16.mxu0 %v961_v28 }
  0x77   :  { %687 = vmatpush3.bf16.msra.mxu1 %v792_v24 }
  0x78   :  { %688 = vmatprep.subr.bf16.mxu1 %v793_v25  ;;  %721 = vmatpush3.bf16.msra.mxu0 %v798_v31 }
  0x79   :  { %722 = vmatprep.subr.bf16.mxu0 %v961_v28 }
  0x7b   :  { %689 = vmatpush3.bf16.msra.mxu1 %v794_v26 }
  0x7c   :  { %734 = vmatprep.subr.bf16.mxu1 %v961_v28  ;;  %723 = vmatpush3.bf16.msra.mxu0 %v799_v32 }
  0x7d   :  { %724 = vmatprep.subr.bf16.mxu0 %v961_v28 }
  0x80   :  { %725 = vmatpush3.bf16.msra.mxu0 %v800_v33 }
  0x81   :  { %726 = vmatprep.subr.bf16.mxu0 %v961_v28 }
  0x84   :  { %727 = vmatpush3.bf16.msra.mxu0 %v801_v51 }
  0x85   :  { %728 = vmatprep.subr.bf16.mxu0 %v961_v28 }
  0x88   :  { %729 = vmatpush3.bf16.msra.mxu0 %v802_v52 }
 0x13e   :  { %v200_v41 = vpop.f32.mrb[0].mxu0 }
 0x13f   :  { %v201_v42 = vadd.f32 %v200_v41, %v115_v39  ;;  %v202_v43 = vpop.f32.mrb[1].mxu0 }
 0x140   :  { %v203_v44 = vadd.f32 %v202_v43, %v119_v40  ;;  %v204_v45 = vpop.f32.mrb[2].mxu0 }
 0x141   :  { %v207_v46 = vmax.f32 %v201_v42, 0.0  ;;  %v205_v47 = vpop.f32.mrb[3].mxu0 }
 0x142   :  { %v208_v48 = vmax.f32 %v203_v44, 0.0 }
 0x143   :  { %v209_v50 = vpack.c.bf16 %v207_v46, %v207_v46 }
 0x144   :  { %v210_v49 = vpack.c.bf16 %v208_v48, %v208_v48 }
 0x146   :  { %378 = vmatprep.mubr.bf16.mxu1 %v210_v49 }
 0x147   :  { %379 = vmatmul.mubr.bf16.vlgmr.msra.gmra.mrb[0].mxu1 %v209_v50 }
 0x148   :  { %750 = vmatprep.mubr.msk.bf16.mxu1 %vm962_vm1, %v961_v28  ;;  %735 = vmatpush3.bf16.msra.mxu1 %v803_v53 }
 0x149   :  { %736 = vmatprep.subr.bf16.mxu1 %v961_v28 }
 0x14c   :  { %737 = vmatpush3.bf16.msra.mxu1 %v804_v54 }
 0x14d   :  { %738 = vmatprep.subr.bf16.mxu1 %v961_v28 }
 0x150   :  { %739 = vmatpush3.bf16.msra.mxu1 %v805_v55 }
 0x151   :  { %740 = vmatprep.subr.bf16.mxu1 %v961_v28 }
 0x154   :  { %741 = vmatpush3.bf16.msra.mxu1 %v806_v56 }
 0x155   :  { %742 = vmatprep.subr.bf16.mxu1 %v961_v28 }
 0x158   :  { %743 = vmatpush3.bf16.msra.mxu1 %v807_v57 }
 0x159   :  { %744 = vmatprep.subr.bf16.mxu1 %v961_v28 }
 0x15c   :  { %745 = vmatpush3.bf16.msra.mxu1 %v808_v58 }
 0x15d   :  { %746 = vmatprep.subr.bf16.mxu1 %v961_v28 }
 0x160   :  { %747 = vmatpush3.bf16.msra.mxu1 %v809_v4 }
 0x161   :  { %748 = vmatprep.subr.bf16.mxu1 %v961_v28 }
 0x164   :  { %749 = vmatpush3.bf16.msra.mxu1 %v810_v5 }
 0x21a   :  { %v690_v59 = vpop.f32.mrb[0].mxu1 }
 0x21b   :  { %v691_v61 = vpop.f32.mrb[1].mxu1 }
 0x21c   :  { %v692_v62 = vadd.f32 %v691_v61, %v690_v59  ;;  %v693_v63 = vpop.f32.mrb[2].mxu1 }
 0x21d   :  { %v694_v0 = vpop.f32.mrb[3].mxu1 }
 0x21e   :  { %v381_v1 = vadd.f32 %v692_v62, %v639_v60 }
 0x220   :  { %v386_v2 = vmax.f32 %v381_v1, 0.0 }
 0x222   :  { %v387_v3 = vpack.c.bf16 %v386_v2, %v386_v2 }
 0x224   :  { %731 = vmatmul.mubr.bf16.vlgmr.msra.gmra.mrb[4].mxu0 %v387_v3 }
 0x2f7   :  { %v493_v7 = vpop.f32.mrb[4].mxu0 }
 0x2f8   :  { %v494_v8 = vadd.f32 %v656_v6, %v493_v7  ;;  %v732_v9 = vpop.f32.mrb[5].mxu0 }
 0x2f9   :  { %v496_v10 = vpop.f32.mrb[6].mxu0 }
 0x2fa   :  { %v499_v11 = vmax.f32 %v494_v8, 0.0  ;;  %v733_v12 = vpop.f32.mrb[7].mxu0 }
 0x2fc   :  { %v500_v13 = vpack.c.bf16 %v499_v11, %v499_v11 }
 0x2fe   :  { %751 = vmatmul.mubr.bf16.vlgmr.msra.gmra.mrb[4].mxu1 %v500_v13 }
 0x3d1   :  { %v606_v15 = vpop.f32.mrb[4].mxu1 }
 0x3d2   :  { %v607_v16 = vadd.f32 %v665_v14, %v606_v15  ;;  %v752_v17 = vpop.f32.mrb[5].mxu1 }
 0x3d3   :  { %v609_v18 = vpop.f32.mrb[6].mxu1 }
 0x3d4   :  { %612 = vst [vmem:[#allocation11] sm:$0xff] %v607_v16  ;;  %v753_v19 = vpop.f32.mrb[7].mxu1 }
 0x3d5   :  { %932 = shalt.err (!%p929_p2)
}
 0x3d6   :  { %s933_s8 = scalar_lea.hbm %s1134_s9, 128 }
 0x3d7   :  { %p934_p3 = scmp.ne.s32.totalorder %s1134_s9, %s933_s8  ;;  %p937_p4 = scmp.lt.u32.totalorder %s933_s8, %s1134_s9 }
 0x3d9   :  { %p939_p5 = pnand %p937_p4, %p934_p3 }
 0x3db   :  { %942 = shalt.err (!%p939_p5)
}
 0x3dc   :  { %622 = dma.vmem_to_hbm [thread:$0]  %s620_s12, 128, %s1134_s9, [#allocation4]  }
 0x3dd   :  { %949 = dma.done.wait [#allocation4], 128  }
 0x3de   :  { %950 = vsyncadd [#allocation4], 4294967168 }
 0x3df   :  { %626 = vsyncpa [#allocation3], 1 }
 0x3e0   :  { %627 = vsyncpa [#allocation6], 1 }
 0x3e1   :  { %628 = vsyncpa [#allocation9], 1 }
 0x3e2   :  { %629 = vsyncpa [#allocation4], 1 }

</bundles_post_ra>
